<compile_context>
chip_gen: v7x
topology: tpu7x:2x2x1
jax: 0.10.0
libtpu: 0.0.40
codegen_flags: <defaults>
</compile_context>

<pallas_src>
import functools

import jax
import jax.numpy as jnp
from jax.experimental import pallas as pl
from jax.experimental.pallas import tpu as pltpu

_LANES = 128
_SUBLANES = 8
_MAX_TILE_ROWS = 512  # 512 x 128 x 4 B = 256 KiB per input block


def _sndis_loss_kernel(pos_ref, neg_ref, out_ref, *,
                       w_over_npos: float, w_over_nneg: float):
    # pos_ref / neg_ref blocks: (TR, 128) f32 ; out_ref block: (1, 1) f32
    @pl.when(pl.program_id(0) == 0)
    def _():
        out_ref[...] = jnp.zeros_like(out_ref)

    pos_term = jnp.maximum(jnp.float32(1.0) - pos_ref[...], jnp.float32(0.0))
    neg_term = jnp.maximum(jnp.float32(1.0) + neg_ref[...], jnp.float32(0.0))

    # weight / N folded into compile-time constants -> no finalize step.
    out_ref[...] += (
        jnp.sum(pos_term, keepdims=True) * jnp.float32(w_over_npos)
        + jnp.sum(neg_term, keepdims=True) * jnp.float32(w_over_nneg)
    )


def _padded_rows(n_elems: int) -> int:
    rows = -(-n_elems // _LANES)
    return -(-rows // _SUBLANES) * _SUBLANES


def _to_lane_rows(x, pad_value: float, n_rows: int):
    """Flatten to f32 and pad (hinge-neutral value) into a (n_rows, 128) slab."""
    flat = x.reshape(-1).astype(jnp.float32)
    total = n_rows * _LANES
    flat = jnp.pad(flat, (0, total - flat.size), constant_values=pad_value)
    return flat.reshape(n_rows, _LANES)


def sndis_loss(pos, neg, weight: float = 1.0):
    """Pallas implementation of SNDisLoss.forward.

    pos, neg: discriminator outputs of arbitrary shape.
    Returns a scalar: weight * (mean(relu(1 - pos)) + mean(relu(1 + neg))).
    """
    n_pos = int(pos.size)
    n_neg = int(neg.size)

    rows = max(_padded_rows(n_pos), _padded_rows(n_neg))
    tile_rows = min(rows, _MAX_TILE_ROWS)           # multiple of 8 by construction
    rows = -(-rows // tile_rows) * tile_rows        # pad rows to a tile multiple
    grid = rows // tile_rows

    pos_rows = _to_lane_rows(pos, 1.0, rows)        # relu(1 - 1)   == 0 on padding
    neg_rows = _to_lane_rows(neg, -1.0, rows)       # relu(1 + -1)  == 0 on padding

    cost = pl.CostEstimate(
        flops=3 * (n_pos + n_neg),
        transcendentals=0,
        bytes_accessed=2 * rows * _LANES * 4 + 4,
    )

    kernel = functools.partial(
        _sndis_loss_kernel,
        w_over_npos=float(weight) / float(n_pos),
        w_over_nneg=float(weight) / float(n_neg),
    )

    out = pl.pallas_call(
        kernel,
        out_shape=jax.ShapeDtypeStruct((1, 1), jnp.float32),
        grid=(grid,),
        in_specs=[
            pl.BlockSpec((tile_rows, _LANES), lambda r: (r, 0)),
            pl.BlockSpec((tile_rows, _LANES), lambda r: (r, 0)),
        ],
        out_specs=pl.BlockSpec((1, 1), lambda r: (0, 0)),
        compiler_params=pltpu.CompilerParams(
            dimension_semantics=("arbitrary",)),   # output-resident reduction axis
        cost_estimate=cost,
    )(pos_rows, neg_rows)

    return out[0, 0]


def _reference_sndis_loss(pos, neg, weight: float = 1.0):
    """Pure-JAX reference mirroring the PyTorch module (for verification)."""
    return weight * (jnp.mean(jax.nn.relu(1.0 - pos))
                     + jnp.mean(jax.nn.relu(1.0 + neg)))


if __name__ == "__main__":
    # Discriminator scores for real (pos) and fake (neg) samples:
    # batch=2, channels=4, 16x16 spatial feature-map outputs (SN-PatchGAN style).
    key = jax.random.PRNGKey(0)
    kp, kn = jax.random.split(key)
    pos = jax.random.normal(kp, (2, 4, 16, 16), dtype=jnp.float32)
    neg = jax.random.normal(kn, (2, 4, 16, 16), dtype=jnp.float32)
    weight = 1.0

    loss = sndis_loss(pos, neg, weight=weight)
    loss = jax.block_until_ready(loss)

    ref = _reference_sndis_loss(pos, neg, weight=weight)
    assert loss.shape == ()
    assert jnp.allclose(loss, ref, atol=1e-5, rtol=1e-5), (loss, ref)

    print("KERNEL_OK")
</pallas_src>

<mosaic_0001>
module attributes {stable_mosaic.version = 11 : i64} {
  func.func @_sndis_loss_kernel(%arg0: i32, %arg1: memref<16x128xf32, #tpu.memory_space<vmem>>, %arg2: memref<16x128xf32, #tpu.memory_space<vmem>>, %arg3: memref<1x1xf32, #tpu.memory_space<vmem>>) attributes {dimension_semantics = [#tpu.dimension_semantics<arbitrary>], iteration_bounds = array<i64: 1>, scalar_prefetch = 0 : i64, scratch_operands = 0 : i64, tpu.core_type = #tpu.core_type<tc>, window_params = [{transform_indices = @transform_0, window_bounds = array<i64: 16, 128>}, {transform_indices = @transform_1, window_bounds = array<i64: 16, 128>}, {pipeline_mode = #tpu.pipeline_mode<synchronous>, transform_indices = @transform_2, window_bounds = array<i64: 1, 1>}]} {
    %c0_i32 = arith.constant 0 : i32
    %0 = arith.cmpi eq, %arg0, %c0_i32 : i32
    %1 = arith.extui %0 : i1 to i32
    %c0_i32_0 = arith.constant 0 : i32
    %2 = arith.cmpi ne, %1, %c0_i32_0 : i32
    scf.if %2 {
      %cst_15 = arith.constant 0.000000e+00 : f32
      %31 = vector.broadcast %cst_15 : f32 to vector<1x1xf32>
      %c0_16 = arith.constant 0 : index
      %c0_17 = arith.constant 0 : index
      %32 = vector.load %arg3[%c0_16, %c0_17] : memref<1x1xf32, #tpu.memory_space<vmem>>, vector<1x1xf32>
      tpu.vector_store %arg3[%c0_16, %c0_17], %31 {strides = array<i32>} : memref<1x1xf32, #tpu.memory_space<vmem>>, vector<1x1xf32>,
    } else {
    }
    %c0 = arith.constant 0 : index
    %c0_1 = arith.constant 0 : index
    %3 = vector.load %arg1[%c0, %c0_1] : memref<16x128xf32, #tpu.memory_space<vmem>>, vector<16x128xf32>
    %cst = arith.constant 1.000000e+00 : f32
    %4 = vector.broadcast %cst : f32 to vector<16x128xf32>
    %5 = arith.subf %4, %3 : vector<16x128xf32>
    %cst_2 = arith.constant 0.000000e+00 : f32
    %6 = vector.broadcast %cst_2 : f32 to vector<16x128xf32>
    %7 = arith.maximumf %5, %6 : vector<16x128xf32>
    %c0_3 = arith.constant 0 : index
    %c0_4 = arith.constant 0 : index
    %8 = vector.load %arg2[%c0_3, %c0_4] : memref<16x128xf32, #tpu.memory_space<vmem>>, vector<16x128xf32>
    %cst_5 = arith.constant 1.000000e+00 : f32
    %9 = vector.broadcast %cst_5 : f32 to vector<16x128xf32>
    %10 = arith.addf %9, %8 : vector<16x128xf32>
    %cst_6 = arith.constant 0.000000e+00 : f32
    %11 = vector.broadcast %cst_6 : f32 to vector<16x128xf32>
    %12 = arith.maximumf %10, %11 : vector<16x128xf32>
    %c0_7 = arith.constant 0 : index
    %c0_8 = arith.constant 0 : index
    %13 = vector.load %arg3[%c0_7, %c0_8] : memref<1x1xf32, #tpu.memory_space<vmem>>, vector<1x1xf32>
    %14 = vector.shape_cast %7 : vector<16x128xf32> to vector<1x16x128xf32>
    %cst_9 = arith.constant dense<0.000000e+00> : vector<1xf32>
    %15 = vector.multi_reduction <add>, %14, %cst_9 [1, 2] : vector<1x16x128xf32> to vector<1xf32>
    %16 = vector.shape_cast %15 : vector<1xf32> to vector<1x1x1xf32>
    %17 = vector.extract %16[0, 0, 0] : f32 from vector<1x1x1xf32>
    %18 = vector.broadcast %17 : f32 to vector<1x1xf32>
    %cst_10 = arith.constant 4.8828125E-4 : f32
    %19 = vector.broadcast %cst_10 : f32 to vector<1x1xf32>
    %20 = arith.mulf %18, %19 : vector<1x1xf32>
    %21 = vector.shape_cast %12 : vector<16x128xf32> to vector<1x16x128xf32>
    %cst_11 = arith.constant dense<0.000000e+00> : vector<1xf32>
    %22 = vector.multi_reduction <add>, %21, %cst_11 [1, 2] : vector<1x16x128xf32> to vector<1xf32>
    %23 = vector.shape_cast %22 : vector<1xf32> to vector<1x1x1xf32>
    %24 = vector.extract %23[0, 0, 0] : f32 from vector<1x1x1xf32>
    %25 = vector.broadcast %24 : f32 to vector<1x1xf32>
    %cst_12 = arith.constant 4.8828125E-4 : f32
    %26 = vector.broadcast %cst_12 : f32 to vector<1x1xf32>
    %27 = arith.mulf %25, %26 : vector<1x1xf32>
    %28 = arith.addf %20, %27 : vector<1x1xf32>
    %29 = arith.addf %13, %28 : vector<1x1xf32>
    %c0_13 = arith.constant 0 : index
    %c0_14 = arith.constant 0 : index
    %30 = vector.load %arg3[%c0_13, %c0_14] : memref<1x1xf32, #tpu.memory_space<vmem>>, vector<1x1xf32>
    tpu.vector_store %arg3[%c0_13, %c0_14], %29 {strides = array<i32>} : memref<1x1xf32, #tpu.memory_space<vmem>>, vector<1x1xf32>,
    return
  }
  func.func @transform_0(%arg0: i32) -> (i32, i32) {
    %c0_i32 = arith.constant 0 : i32
    %c0_i32_0 = arith.constant 0 : i32
    return %arg0, %c0_i32 : i32, i32
  }
  func.func @transform_1(%arg0: i32) -> (i32, i32) {
    %c0_i32 = arith.constant 0 : i32
    %c0_i32_0 = arith.constant 0 : i32
    return %arg0, %c0_i32 : i32, i32
  }
  func.func @transform_2(%arg0: i32) -> (i32, i32) {
    %c0_i32 = arith.constant 0 : i32
    %c0_i32_0 = arith.constant 0 : i32
    %c0_i32_1 = arith.constant 0 : i32
    return %c0_i32, %c0_i32_0 : i32, i32
  }
}

</mosaic_0001>

<bundles_post_ra>
// kernel: tpu_custom_call.1
= control target key start
LH: loop header
LB: loop body
LE: loop exit
PB: predicated region body
PF: predicated region fallthrough
CT: control target
= control target key end

     0   :  { %7 = vsyncpa [#allocation3], 0  ;;  %s244_s0 = inlined_call_operand.hbm [shape: f32[16,128], index: 0, kind: input, shape index: {}]   ;;  %s245_s1 = inlined_call_operand.hbm [shape: f32[16,128], index: 1, kind: input, shape index: {}]   ;;  %s246_s2 = inlined_call_operand.hbm [shape: f32[1,1], index: 2, kind: output, shape index: {}]  }
   0x1   :  { %8 = vsyncpa [#allocation6], 0 }
   0x2   :  { %9 = vsyncpa [#allocation4], 0  ;;  %s185_s9 = smov [#allocation2]   ;;  %s113_s13 = scalar_lea.hbm %s244_s0, 256 }
   0x3   :  { %s15_s10 = sshll.u32 %s185_s9, 4  ;;  %p114_p0 = scmp.ne.s32.totalorder %s244_s0, %s113_s13  ;;  %s16_s10 = int_to_ptr.vmem [resolvable:$true] %s15_s10 }
   0x4   :  { %p117_p1 = scmp.lt.u32.totalorder %s113_s13, %s244_s0 }
   0x6   :  { %p119_p2 = pnand %p117_p1, %p114_p0 }
   0x8   :  { %122 = shalt.err (!%p119_p2)
}
   0x9   :  { %s123_s18 = scalar_lea.vmem %s16_s10, 256  ;;  %p128_p4 = scmp.lt.s32.totalorder %s16_s10, %s16_s10 }
   0xa   :  { %p124_p3 = scmp.ne.s32.totalorder %s16_s10, %s123_s18  ;;  %p129_p5 = scmp.lt.s32.totalorder %s123_s18, %s123_s18 }
   0xc   :  { %p130_p6 = por %p129_p5, %p128_p4 }
   0xe   :  { %p131_p7 = pnand %p130_p6, %p124_p3 }
  0x10   :  { %134 = shalt.err (!%p131_p7)
}
  0x11   :  { %s186_s19 = smov 128   ;;  %s187_s20 = smov 8  }
  0x12   :  { %21 = dma.hbm_to_vmem [thread:$0]  %s244_s0, 256, %s16_s10, [#allocation3], %s186_s19, %s186_s19, %s187_s20  }
  0x13   :  { %s188_s23 = smov [#allocation5]   ;;  %s135_s27 = scalar_lea.hbm %s245_s1, 256 }
  0x14   :  { %s27_s24 = sshll.u32 %s188_s23, 4  ;;  %p136_p8 = scmp.ne.s32.totalorder %s245_s1, %s135_s27  ;;  %s28_s24 = int_to_ptr.vmem [resolvable:$true] %s27_s24 }
  0x15   :  { %p139_p9 = scmp.lt.u32.totalorder %s135_s27, %s245_s1 }
  0x17   :  { %p141_p10 = pnand %p139_p9, %p136_p8 }
  0x19   :  { %144 = shalt.err (!%p141_p10)
}
  0x1a   :  { %s145_s4 = scalar_lea.vmem %s28_s24, 256  ;;  %p150_p12 = scmp.lt.s32.totalorder %s28_s24, %s28_s24 }
  0x1b   :  { %p146_p11 = scmp.ne.s32.totalorder %s28_s24, %s145_s4  ;;  %p151_p13 = scmp.lt.s32.totalorder %s145_s4, %s145_s4 }
  0x1d   :  { %p152_p0 = por %p151_p13, %p150_p12 }
  0x1f   :  { %p153_p1 = pnand %p152_p0, %p146_p11 }
  0x21   :  { %156 = shalt.err (!%p153_p1)
}
  0x22   :  { %33 = dma.hbm_to_vmem [thread:$0]  %s245_s1, 256, %s28_s24, [#allocation6], %s186_s19, %s186_s19, %s187_s20  }
  0x23   :  { %179 = dma.done.wait [#allocation3], 256  }
  0x24   :  { %180 = vsyncadd [#allocation3], 4294967040 }
  0x25   :  { %181 = dma.done.wait [#allocation6], 256  }
  0x26   :  { %182 = vsyncadd [#allocation6], 4294967040  ;;  %vm44_vm0 = vcmask 0   ;;  %v189_v0 = vmov 0.0   ;;  %v46_v1 = vld [vmem:[#allocation2] sm:$0xff]  ;;  %v47_v2 = vld [vmem:[#allocation2 + $0x8] sm:$0xff] }
  0x27   :  { %45 = vst.msk [vmem:[#allocation7] sm:$0x1] %vm44_vm0, %v189_v0  ;;  %v52_v3 = vld [vmem:[#allocation5] sm:$0xff]  ;;  %v48_v4 = vsub.f32 1.0, %v46_v1  ;;  %v49_v5 = vsub.f32 1.0, %v47_v2  ;;  %v53_v6 = vld [vmem:[#allocation5 + $0x8] sm:$0xff] }
  0x28   :  { %v54_v7 = vadd.f32 1.0, %v52_v3  ;;  %v55_v8 = vadd.f32 1.0, %v53_v6  ;;  %s190_s7 = smov [#allocation7]  }
  0x29   :  { %v50_v9 = vmax.f32 %v48_v4, 0.0  ;;  %v51_v10 = vmax.f32 %v49_v5, 0.0  ;;  %s93_s8 = sshll.u32 %s190_s7, 4  ;;  %s94_s8 = int_to_ptr.vmem [resolvable:$true] %s93_s8 }
  0x2a   :  { %v56_v11 = vmax.f32 %v54_v7, 0.0  ;;  %v57_v12 = vmax.f32 %v55_v8, 0.0  ;;  %s157_s9 = scalar_lea.vmem %s94_s8, 16  ;;  %s161_s10 = scalar_lea.vmem %s94_s8, 32 }
  0x2b   :  { %v59_v13 = vadd.f32 %v51_v10, %v50_v9  ;;  %p158_p2 = scmp.ne.s32.totalorder %s94_s8, %s157_s9  ;;  %p162_p3 = scmp.lt.s32.totalorder %s94_s8, %s94_s8 }
  0x2c   :  { %v71_v14 = vadd.f32 %v57_v12, %v56_v11  ;;  %p163_p4 = scmp.lt.s32.totalorder %s161_s10, %s157_s9 }
  0x2d   :  { %60 = vadd.xlane.f32.xlu0 %v59_v13 }
  0x2e   :  { %v58_v33 = vld [vmem:[#allocation7] sm:$0x1]  ;;  %p164_p5 = por %p163_p4, %p162_p3 }
  0x30   :  { %p165_p6 = pnand %p164_p5, %p158_p2 }
  0x31   :  { %72 = vadd.xlane.f32.xlu0 %v71_v14 }
  0xba   :  { %v61_v15 = vpop.xlane.xlu0 %60 }
  0xbb   :  { %v62_v16 = vrot.slane %v61_v15, 4 }
  0xbd   :  { %v63_v17 = vadd.f32 %v62_v16, %v61_v15 }
  0xbe   :  { %v73_v18 = vpop.xlane.xlu0 %72 }
  0xbf   :  { %v64_v19 = vrot.slane %v63_v17, 2  ;;  %v74_v20 = vrot.slane %v73_v18, 4 }
  0xc1   :  { %v75_v21 = vadd.f32 %v74_v20, %v73_v18  ;;  %v65_v22 = vadd.f32 %v64_v19, %v63_v17 }
  0xc3   :  { %v76_v23 = vrot.slane %v75_v21, 2  ;;  %v66_v24 = vrot.slane %v65_v22, 1 }
  0xc5   :  { %v77_v25 = vadd.f32 %v76_v23, %v75_v21  ;;  %v67_v26 = vadd.f32 %v66_v24, %v65_v22 }
  0xc7   :  { %103 = vpush %v67_v26  ;;  %v78_v27 = vrot.slane %v77_v25, 1 }
  0xc9   :  { %v79_v28 = vadd.f32 %v78_v27, %v77_v25 }
  0xcb   :  { %105 = vpush %v79_v28 }
  0xf8   :  { %s104_s1 = spop %103 }
  0xf9   :  { %v69_v29 = vstv %s104_s1 }
  0xfa   :  { %v70_v31 = vmul.f32 0.00048828125, %v69_v29 }
  0xfc   :  { %s106_s6 = spop %105 }
  0xfd   :  { %v81_v30 = vstv %s106_s6 }
  0xfe   :  { %v82_v32 = vmul.f32 0.00048828125, %v81_v30 }
 0x100   :  { %v83_v34 = vadd.f32 %v82_v32, %v70_v31 }
 0x102   :  { %v84_v35 = vadd.f32 %v83_v34, %v58_v33 }
 0x104   :  { %86 = vst.msk [vmem:[#allocation7] sm:$0x1] %vm44_vm0, %v84_v35 }
 0x105   :  { %168 = shalt.err (!%p165_p6)
}
 0x106   :  { %s169_s13 = scalar_lea.hbm %s246_s2, 16 }
 0x107   :  { %p170_p7 = scmp.ne.s32.totalorder %s246_s2, %s169_s13  ;;  %p173_p8 = scmp.lt.u32.totalorder %s169_s13, %s246_s2 }
 0x109   :  { %p175_p9 = pnand %p173_p8, %p170_p7 }
 0x10b   :  { %178 = shalt.err (!%p175_p9)
}
 0x10c   :  { %96 = dma.vmem_to_hbm [thread:$0]  %s94_s8, 16, %s246_s2, [#allocation4]  }
 0x10d   :  { %183 = dma.done.wait [#allocation4], 16  }
 0x10e   :  { %184 = vsyncadd [#allocation4], 4294967280 }
 0x10f   :  { %100 = vsyncpa [#allocation3], 1 }
 0x110   :  { %101 = vsyncpa [#allocation6], 1 }
 0x111   :  { %102 = vsyncpa [#allocation4], 1 }

</bundles_post_ra>
